<compile_context>
chip_gen: v6e
topology: v6e:2x2x1
jax: 0.10.0
libtpu: 0.0.40
codegen_flags: <defaults>
</compile_context>

<pallas_src>
import functools
import math

import jax
import jax.numpy as jnp
from jax import lax
from jax.experimental import pallas as pl
from jax.experimental.pallas import tpu as pltpu


_FOLD = 128            # reduced rows packed per folded kernel row (small-W path)
_FOLD_MAX_W = 16       # folded path only for W <= 16 (tunable dispatch threshold)
_SIMPLE_MAX_W = 4096   # above this, switch to the chunked-W accumulator path
_MIN_ROW_STEPS = 8     # target at least this many row grid steps


def _cdiv(a, b):
    return (a + b - 1) // b


def _round_up(a, b):
    return _cdiv(a, b) * b


def _sublane(itemsize):
    # packed sublane multiple per dtype width
    return {4: 8, 2: 16, 1: 32}.get(itemsize, 8)


def _hw_config():
    """(per-input block bytes, vmem_limit_bytes or None) per TPU generation."""
    kind = ""
    try:
        kind = jax.devices()[0].device_kind.lower()
    except Exception:
        pass
    if "v7" in kind or "7x" in kind:
        # 3.2 TB/s HBM: bigger blocks amortize the ~0.35us per-step overhead.
        return 8 * 1024 * 1024, 48 * 1024 * 1024
    if "v6" in kind:
        return 6 * 1024 * 1024, 40 * 1024 * 1024
    # v5e (16 MiB scoped-VMEM default), older chips, unknown: stay conservative.
    return 3 * 1024 * 1024, None


def _compiler_params(dims, vmem_limit):
    if vmem_limit is None:
        return pltpu.CompilerParams(dimension_semantics=dims)
    return pltpu.CompilerParams(dimension_semantics=dims,
                                vmem_limit_bytes=vmem_limit)


# --------------------------------------------------------------------------
# Kernel 1: folded small W — input (tm, 128*W) lane-dense, output (tm, 128)
# --------------------------------------------------------------------------
def _pool_fold_kernel(x_ref, o_ref, *, w, kc, rows_sub, pool_type, inv_w):
    n_row = x_ref.shape[0] // rows_sub
    n_col = w                                     # 128-lane columns per folded row

    def do_rows(r0):
        pieces = []
        for c in range(n_col):                    # static, small (w <= 16)
            # One aligned 128-lane column = kc segments of w lanes.
            xs = x_ref[pl.ds(r0, rows_sub), pl.ds(c * 128, 128)]
            x3 = xs.reshape(rows_sub, kc, w)      # small: <= a few vregs live
            if pool_type == "max":
                pieces.append(jnp.max(x3, axis=-1))
            else:
                pieces.append(jnp.sum(x3.astype(jnp.float32), axis=-1) * inv_w)
        row = jnp.concatenate(pieces, axis=-1)    # (rows_sub, 128) lane-dense
        o_ref[pl.ds(r0, rows_sub), :] = row.astype(o_ref.dtype)

    if n_row == 1:
        do_rows(0)
    else:
        def body(i, carry):
            do_rows(pl.multiple_of(i * rows_sub, rows_sub))
            return carry
        lax.fori_loop(0, n_row, body, 0, unroll=2)


# --------------------------------------------------------------------------
# Kernel 2: simple path — input (tm, W) full last dim, output (tm, 1)
# --------------------------------------------------------------------------
def _pool_simple_kernel(x_ref, o_ref, *, rows_sub, pool_type, inv_w):
    n_row = x_ref.shape[0] // rows_sub

    def do_rows(r0):
        x = x_ref[pl.ds(r0, rows_sub), :]
        if pool_type == "max":
            red = jnp.max(x, axis=-1, keepdims=True)
        else:
            red = jnp.sum(x.astype(jnp.float32), axis=-1, keepdims=True) * inv_w
        o_ref[pl.ds(r0, rows_sub), :] = red.astype(o_ref.dtype)

    if n_row == 1:
        do_rows(0)
    else:
        def body(i, carry):
            do_rows(pl.multiple_of(i * rows_sub, rows_sub))
            return carry
        lax.fori_loop(0, n_row, body, 0, unroll=min(4, n_row))


# --------------------------------------------------------------------------
# Kernel 3: huge W — (row, W-chunk) grid, lane-dense (tm, 128) accumulator
# --------------------------------------------------------------------------
def _pool_chunk_kernel(x_ref, o_ref, acc_ref, *, rows_sub, tw, w, pool_type,
                       inv_w, neutral, ragged):
    j = pl.program_id(1)
    n_row = x_ref.shape[0] // rows_sub
    n_lane = tw // 128

    @pl.when(j == 0)
    def _():
        acc_ref[...] = jnp.full(acc_ref.shape, neutral, acc_ref.dtype)

    valid = w - j * tw                            # valid lanes in this chunk

    def fold_rows(r0):
        def lane_body(g, acc):
            c0 = pl.multiple_of(g * 128, 128)
            x = x_ref[pl.ds(r0, rows_sub), pl.ds(c0, 128)]
            if pool_type != "max":
                x = x.astype(jnp.float32)
            if ragged:
                lane = c0 + lax.broadcasted_iota(jnp.int32, x.shape, 1)
                x = jnp.where(lane < valid, x, jnp.asarray(neutral, x.dtype))
            if pool_type == "max":
                return jnp.maximum(acc, x)        # pure VALU fold
            return acc + x

        acc = acc_ref[pl.ds(r0, rows_sub), :]
        acc = lax.fori_loop(0, n_lane, lane_body, acc, unroll=min(4, n_lane))
        acc_ref[pl.ds(r0, rows_sub), :] = acc

    if n_row == 1:
        fold_rows(0)
    else:
        def rbody(i, carry):
            fold_rows(pl.multiple_of(i * rows_sub, rows_sub))
            return carry
        lax.fori_loop(0, n_row, rbody, 0, unroll=2)

    @pl.when(j == pl.num_programs(1) - 1)
    def _():
        # Single cross-lane reduce + scale + store, once per row tile.
        def fin_rows(r0):
            a = acc_ref[pl.ds(r0, rows_sub), :]
            if pool_type == "max":
                red = jnp.max(a, axis=-1, keepdims=True)
            else:
                red = jnp.sum(a, axis=-1, keepdims=True) * inv_w
            o_ref[pl.ds(r0, rows_sub), :] = red.astype(o_ref.dtype)

        if n_row == 1:
            fin_rows(0)
        else:
            def fbody(i, carry):
                fin_rows(pl.multiple_of(i * rows_sub, rows_sub))
                return carry
            lax.fori_loop(0, n_row, fbody, 0, unroll=2)


# --------------------------------------------------------------------------
# Wrappers
# --------------------------------------------------------------------------
def _pool_fold(x2d, pool_type, block_bytes, vmem_limit):
    R, W = x2d.shape
    dtype = x2d.dtype
    itemsize = jnp.dtype(dtype).itemsize
    sub = _sublane(itemsize)
    k = _FOLD
    kc = k // W

    Rf = R // k                                   # exact (dispatch requires R % 128 == 0)
    row_bytes = k * W * itemsize
    if Rf <= sub:
        tm = Rf
        rows_sub = Rf
    else:
        tm = max(sub, (block_bytes // row_bytes) // sub * sub)
        cap = max(sub, _round_up(_cdiv(Rf, _MIN_ROW_STEPS), sub))
        tm = max(sub, min(tm, cap))
        rows_sub = sub
    xf = x2d.reshape(Rf, k * W)                   # free row-major view (no HBM copy)

    out = pl.pallas_call(
        functools.partial(_pool_fold_kernel, w=W, kc=kc, rows_sub=rows_sub,
                          pool_type=pool_type, inv_w=1.0 / W),
        out_shape=jax.ShapeDtypeStruct((Rf, k), dtype),
        grid_spec=pltpu.PrefetchScalarGridSpec(
            num_scalar_prefetch=0,
            grid=(pl.cdiv(Rf, tm),),
            in_specs=[pl.BlockSpec((tm, k * W), lambda i: (i, 0))],
            out_specs=pl.BlockSpec((tm, k), lambda i: (i, 0)),
        ),
        compiler_params=_compiler_params(("parallel",), vmem_limit),
        cost_estimate=pl.CostEstimate(flops=R * W, transcendentals=0,
                                      bytes_accessed=R * W * itemsize + R * itemsize),
    )(xf)
    return out.reshape(-1)


def _pool_simple(x2d, pool_type, block_bytes, vmem_limit):
    R, W = x2d.shape
    dtype = x2d.dtype
    itemsize = jnp.dtype(dtype).itemsize
    sub = _sublane(itemsize)

    if R <= sub:
        tm = R
        rows_sub = R
    else:
        nv = _cdiv(W, 128)                        # vregs per `sub`-row chunk
        rows_sub = sub * max(1, min(8, 16 // nv)) # keep ~<=16 live vregs / chunk
        tm = max(sub, block_bytes // (W * itemsize))
        cap = max(sub, _round_up(_cdiv(R, _MIN_ROW_STEPS), sub))
        tm = min(tm, cap)
        rows_sub = min(rows_sub, max(sub, (tm // sub) * sub))
        rows_sub = max(sub, (rows_sub // sub) * sub)
        tm = max(rows_sub, (tm // rows_sub) * rows_sub)

    out = pl.pallas_call(
        functools.partial(_pool_simple_kernel, rows_sub=rows_sub,
                          pool_type=pool_type, inv_w=1.0 / W),
        out_shape=jax.ShapeDtypeStruct((R, 1), dtype),
        grid_spec=pltpu.PrefetchScalarGridSpec(
            num_scalar_prefetch=0,
            grid=(pl.cdiv(R, tm),),
            in_specs=[pl.BlockSpec((tm, W), lambda i: (i, 0))],
            out_specs=pl.BlockSpec((tm, 1), lambda i: (i, 0)),
        ),
        compiler_params=_compiler_params(("parallel",), vmem_limit),
        cost_estimate=pl.CostEstimate(flops=R * W, transcendentals=0,
                                      bytes_accessed=R * W * itemsize + R * itemsize),
    )(x2d)
    return out.reshape(-1)


def _pool_chunked(x2d, pool_type, block_bytes, vmem_limit):
    R, W = x2d.shape
    dtype = x2d.dtype
    itemsize = jnp.dtype(dtype).itemsize
    sub = _sublane(itemsize)

    if R <= sub:
        tm = R
        rows_sub = R
    else:
        cap = max(sub, _round_up(_cdiv(R, _MIN_ROW_STEPS), sub))
        tm = min(cap, max(sub, (block_bytes // (512 * itemsize) // sub) * sub))
        rows_sub = sub
    tw = (block_bytes // max(tm, 1) // itemsize // 128) * 128
    tw = max(128, min(tw, _round_up(W, 128)))
    ragged = (W % tw) != 0
    nw = _cdiv(W, tw)

    if pool_type == "max":
        if jnp.issubdtype(dtype, jnp.floating):
            neutral = float("-inf")
        else:
            neutral = int(jnp.iinfo(dtype).min)
        acc_dtype = dtype
    else:
        neutral = 0.0
        acc_dtype = jnp.float32

    out = pl.pallas_call(
        functools.partial(_pool_chunk_kernel, rows_sub=rows_sub, tw=tw, w=W,
                          pool_type=pool_type, inv_w=1.0 / W, neutral=neutral,
                          ragged=ragged),
        out_shape=jax.ShapeDtypeStruct((R, 1), dtype),
        grid_spec=pltpu.PrefetchScalarGridSpec(
            num_scalar_prefetch=0,
            grid=(pl.cdiv(R, tm), nw),
            in_specs=[pl.BlockSpec((tm, tw), lambda i, j: (i, j))],
            out_specs=pl.BlockSpec((tm, 1), lambda i, j: (i, 0)),
            scratch_shapes=[pltpu.VMEM((tm, 128), acc_dtype)],
        ),
        compiler_params=_compiler_params(("parallel", "arbitrary"), vmem_limit),
        cost_estimate=pl.CostEstimate(flops=R * W, transcendentals=0,
                                      bytes_accessed=R * W * itemsize + R * itemsize),
    )(x2d)
    return out.reshape(-1)


def pallas_pool(x: jax.Array, pool_type: str, *, block_bytes=None) -> jax.Array:
    """Reduce x over its last dim with max or mean (PyTorch `Pool.forward`)."""
    if pool_type not in ("max", "mean"):
        return x                                  # module passes through otherwise

    w = x.shape[-1]
    lead = x.shape[:-1]
    r = math.prod(lead) if lead else 1
    x2d = x.reshape(r, w)

    default_block, vmem_limit = _hw_config()
    if block_bytes is None:
        block_bytes = default_block

    itemsize = jnp.dtype(x.dtype).itemsize
    sub = _sublane(itemsize)
    if w <= _FOLD_MAX_W and _FOLD % w == 0 and r >= _FOLD and r % _FOLD == 0:
        flat = _pool_fold(x2d, pool_type, block_bytes, vmem_limit)
    elif w <= _SIMPLE_MAX_W and sub * w * itemsize <= block_bytes:
        flat = _pool_simple(x2d, pool_type, block_bytes, vmem_limit)
    else:
        flat = _pool_chunked(x2d, pool_type, block_bytes, vmem_limit)
    return flat.reshape(lead)


class Pool:
    """Drop-in analogue of the PyTorch module."""

    def __init__(self, type):
        self.type = type

    def __call__(self, x):
        return pallas_pool(x, self.type)


if __name__ == "__main__":
    key = jax.random.PRNGKey(0)
    k1, k2, k3, k4 = jax.random.split(key, 4)

    # Folded small-W path: (2, 4, 16, 16) -> R = 128, W = 16.
    x_small = jax.random.normal(k1, (2, 4, 16, 16), dtype=jnp.float32)
    # Simple full-W path: (2, 4, 8, 256) -> R = 64, W = 256.
    x_wide = jax.random.normal(k2, (2, 4, 8, 256), dtype=jnp.float32)
    # Simple path with ragged rows + non-pow2 W (exercises partial row blocks).
    x_ragged = jax.random.normal(k3, (3, 5, 7, 48), dtype=jnp.float32)

    ok = True
    for x in (x_small, x_wide, x_ragged):
        for pool_type in ("max", "mean"):
            out = jax.block_until_ready(pallas_pool(x, pool_type))
            ref = jnp.max(x, axis=-1) if pool_type == "max" else jnp.mean(x, axis=-1)
            if out.shape != ref.shape or not jnp.allclose(out, ref, atol=1e-5, rtol=1e-5):
                ok = False

    # Exercise the chunked-W accumulator path (force a tiny block budget so the
    # last dim is split into masked chunks without needing a huge input).
    x_chunk = jax.random.normal(k4, (2, 4, 9, 900), dtype=jnp.float32)
    for pool_type in ("max", "mean"):
        flat = jax.block_until_ready(
            _pool_chunked(x_chunk.reshape(-1, 900), pool_type, 16 * 1024, None))
        out = flat.reshape(x_chunk.shape[:-1])
        ref = jnp.max(x_chunk, -1) if pool_type == "max" else jnp.mean(x_chunk, -1)
        if out.shape != ref.shape or not jnp.allclose(out, ref, atol=1e-5, rtol=1e-5):
            ok = False

    # Pass-through pool type, as in the PyTorch module.
    if Pool("none")(x_small).shape != x_small.shape:
        ok = False

    if ok:
        print("KERNEL_OK")
</pallas_src>

<mosaic_0001>
module attributes {stable_mosaic.version = 11 : i64} {
  func.func @_pool_fold_kernel(%arg0: i32, %arg1: memref<1x2048xf32, #tpu.memory_space<vmem>>, %arg2: memref<1x128xf32, #tpu.memory_space<vmem>>) attributes {dimension_semantics = [#tpu.dimension_semantics<parallel>], iteration_bounds = array<i64: 1>, scalar_prefetch = 0 : i64, scratch_operands = 0 : i64, tpu.core_type = #tpu.core_type<tc>, window_params = [{transform_indices = @transform_0, window_bounds = array<i64: 1, 2048>}, {transform_indices = @transform_1, window_bounds = array<i64: 1, 128>}]} {
    %c0 = arith.constant 0 : index
    %c0_0 = arith.constant 0 : index
    %0 = vector.load %arg1[%c0, %c0_0] : memref<1x2048xf32, #tpu.memory_space<vmem>>, vector<1x128xf32>
    %1 = vector.shape_cast %0 : vector<1x128xf32> to vector<1x8x16xf32>
    %cst = arith.constant dense<0xFF800000> : vector<1x8xf32>
    %2 = vector.multi_reduction <maximumf>, %1, %cst [2] : vector<1x8x16xf32> to vector<1x8xf32>
    %c0_1 = arith.constant 0 : index
    %c128 = arith.constant 128 : index
    %3 = vector.load %arg1[%c0_1, %c128] : memref<1x2048xf32, #tpu.memory_space<vmem>>, vector<1x128xf32>
    %4 = vector.shape_cast %3 : vector<1x128xf32> to vector<1x8x16xf32>
    %cst_2 = arith.constant dense<0xFF800000> : vector<1x8xf32>
    %5 = vector.multi_reduction <maximumf>, %4, %cst_2 [2] : vector<1x8x16xf32> to vector<1x8xf32>
    %c0_3 = arith.constant 0 : index
    %c256 = arith.constant 256 : index
    %6 = vector.load %arg1[%c0_3, %c256] : memref<1x2048xf32, #tpu.memory_space<vmem>>, vector<1x128xf32>
    %7 = vector.shape_cast %6 : vector<1x128xf32> to vector<1x8x16xf32>
    %cst_4 = arith.constant dense<0xFF800000> : vector<1x8xf32>
    %8 = vector.multi_reduction <maximumf>, %7, %cst_4 [2] : vector<1x8x16xf32> to vector<1x8xf32>
    %c0_5 = arith.constant 0 : index
    %c384 = arith.constant 384 : index
    %9 = vector.load %arg1[%c0_5, %c384] : memref<1x2048xf32, #tpu.memory_space<vmem>>, vector<1x128xf32>
    %10 = vector.shape_cast %9 : vector<1x128xf32> to vector<1x8x16xf32>
    %cst_6 = arith.constant dense<0xFF800000> : vector<1x8xf32>
    %11 = vector.multi_reduction <maximumf>, %10, %cst_6 [2] : vector<1x8x16xf32> to vector<1x8xf32>
    %c0_7 = arith.constant 0 : index
    %c512 = arith.constant 512 : index
    %12 = vector.load %arg1[%c0_7, %c512] : memref<1x2048xf32, #tpu.memory_space<vmem>>, vector<1x128xf32>
    %13 = vector.shape_cast %12 : vector<1x128xf32> to vector<1x8x16xf32>
    %cst_8 = arith.constant dense<0xFF800000> : vector<1x8xf32>
    %14 = vector.multi_reduction <maximumf>, %13, %cst_8 [2] : vector<1x8x16xf32> to vector<1x8xf32>
    %c0_9 = arith.constant 0 : index
    %c640 = arith.constant 640 : index
    %15 = vector.load %arg1[%c0_9, %c640] : memref<1x2048xf32, #tpu.memory_space<vmem>>, vector<1x128xf32>
    %16 = vector.shape_cast %15 : vector<1x128xf32> to vector<1x8x16xf32>
    %cst_10 = arith.constant dense<0xFF800000> : vector<1x8xf32>
    %17 = vector.multi_reduction <maximumf>, %16, %cst_10 [2] : vector<1x8x16xf32> to vector<1x8xf32>
    %c0_11 = arith.constant 0 : index
    %c768 = arith.constant 768 : index
    %18 = vector.load %arg1[%c0_11, %c768] : memref<1x2048xf32, #tpu.memory_space<vmem>>, vector<1x128xf32>
    %19 = vector.shape_cast %18 : vector<1x128xf32> to vector<1x8x16xf32>
    %cst_12 = arith.constant dense<0xFF800000> : vector<1x8xf32>
    %20 = vector.multi_reduction <maximumf>, %19, %cst_12 [2] : vector<1x8x16xf32> to vector<1x8xf32>
    %c0_13 = arith.constant 0 : index
    %c896 = arith.constant 896 : index
    %21 = vector.load %arg1[%c0_13, %c896] : memref<1x2048xf32, #tpu.memory_space<vmem>>, vector<1x128xf32>
    %22 = vector.shape_cast %21 : vector<1x128xf32> to vector<1x8x16xf32>
    %cst_14 = arith.constant dense<0xFF800000> : vector<1x8xf32>
    %23 = vector.multi_reduction <maximumf>, %22, %cst_14 [2] : vector<1x8x16xf32> to vector<1x8xf32>
    %c0_15 = arith.constant 0 : index
    %c1024 = arith.constant 1024 : index
    %24 = vector.load %arg1[%c0_15, %c1024] : memref<1x2048xf32, #tpu.memory_space<vmem>>, vector<1x128xf32>
    %25 = vector.shape_cast %24 : vector<1x128xf32> to vector<1x8x16xf32>
    %cst_16 = arith.constant dense<0xFF800000> : vector<1x8xf32>
    %26 = vector.multi_reduction <maximumf>, %25, %cst_16 [2] : vector<1x8x16xf32> to vector<1x8xf32>
    %c0_17 = arith.constant 0 : index
    %c1152 = arith.constant 1152 : index
    %27 = vector.load %arg1[%c0_17, %c1152] : memref<1x2048xf32, #tpu.memory_space<vmem>>, vector<1x128xf32>
    %28 = vector.shape_cast %27 : vector<1x128xf32> to vector<1x8x16xf32>
    %cst_18 = arith.constant dense<0xFF800000> : vector<1x8xf32>
    %29 = vector.multi_reduction <maximumf>, %28, %cst_18 [2] : vector<1x8x16xf32> to vector<1x8xf32>
    %c0_19 = arith.constant 0 : index
    %c1280 = arith.constant 1280 : index
    %30 = vector.load %arg1[%c0_19, %c1280] : memref<1x2048xf32, #tpu.memory_space<vmem>>, vector<1x128xf32>
    %31 = vector.shape_cast %30 : vector<1x128xf32> to vector<1x8x16xf32>
    %cst_20 = arith.constant dense<0xFF800000> : vector<1x8xf32>
    %32 = vector.multi_reduction <maximumf>, %31, %cst_20 [2] : vector<1x8x16xf32> to vector<1x8xf32>
    %c0_21 = arith.constant 0 : index
    %c1408 = arith.constant 1408 : index
    %33 = vector.load %arg1[%c0_21, %c1408] : memref<1x2048xf32, #tpu.memory_space<vmem>>, vector<1x128xf32>
    %34 = vector.shape_cast %33 : vector<1x128xf32> to vector<1x8x16xf32>
    %cst_22 = arith.constant dense<0xFF800000> : vector<1x8xf32>
    %35 = vector.multi_reduction <maximumf>, %34, %cst_22 [2] : vector<1x8x16xf32> to vector<1x8xf32>
    %c0_23 = arith.constant 0 : index
    %c1536 = arith.constant 1536 : index
    %36 = vector.load %arg1[%c0_23, %c1536] : memref<1x2048xf32, #tpu.memory_space<vmem>>, vector<1x128xf32>
    %37 = vector.shape_cast %36 : vector<1x128xf32> to vector<1x8x16xf32>
    %cst_24 = arith.constant dense<0xFF800000> : vector<1x8xf32>
    %38 = vector.multi_reduction <maximumf>, %37, %cst_24 [2] : vector<1x8x16xf32> to vector<1x8xf32>
    %c0_25 = arith.constant 0 : index
    %c1664 = arith.constant 1664 : index
    %39 = vector.load %arg1[%c0_25, %c1664] : memref<1x2048xf32, #tpu.memory_space<vmem>>, vector<1x128xf32>
    %40 = vector.shape_cast %39 : vector<1x128xf32> to vector<1x8x16xf32>
    %cst_26 = arith.constant dense<0xFF800000> : vector<1x8xf32>
    %41 = vector.multi_reduction <maximumf>, %40, %cst_26 [2] : vector<1x8x16xf32> to vector<1x8xf32>
    %c0_27 = arith.constant 0 : index
    %c1792 = arith.constant 1792 : index
    %42 = vector.load %arg1[%c0_27, %c1792] : memref<1x2048xf32, #tpu.memory_space<vmem>>, vector<1x128xf32>
    %43 = vector.shape_cast %42 : vector<1x128xf32> to vector<1x8x16xf32>
    %cst_28 = arith.constant dense<0xFF800000> : vector<1x8xf32>
    %44 = vector.multi_reduction <maximumf>, %43, %cst_28 [2] : vector<1x8x16xf32> to vector<1x8xf32>
    %c0_29 = arith.constant 0 : index
    %c1920 = arith.constant 1920 : index
    %45 = vector.load %arg1[%c0_29, %c1920] : memref<1x2048xf32, #tpu.memory_space<vmem>>, vector<1x128xf32>
    %46 = vector.shape_cast %45 : vector<1x128xf32> to vector<1x8x16xf32>
    %cst_30 = arith.constant dense<0xFF800000> : vector<1x8xf32>
    %47 = vector.multi_reduction <maximumf>, %46, %cst_30 [2] : vector<1x8x16xf32> to vector<1x8xf32>
    %48 = tpu.concatenate %2, %5, %8, %11, %14, %17, %20, %23, %26, %29, %32, %35, %38, %41, %44, %47 in 1 : vector<1x8xf32>, vector<1x8xf32>, vector<1x8xf32>, vector<1x8xf32>, vector<1x8xf32>, vector<1x8xf32>, vector<1x8xf32>, vector<1x8xf32>, vector<1x8xf32>, vector<1x8xf32>, vector<1x8xf32>, vector<1x8xf32>, vector<1x8xf32>, vector<1x8xf32>, vector<1x8xf32>, vector<1x8xf32> -> vector<1x128xf32>
    %c0_31 = arith.constant 0 : index
    %c0_32 = arith.constant 0 : index
    %49 = vector.load %arg2[%c0_31, %c0_32] : memref<1x128xf32, #tpu.memory_space<vmem>>, vector<1x128xf32>
    tpu.vector_store %arg2[%c0_31, %c0_32], %48 {strides = array<i32>} : memref<1x128xf32, #tpu.memory_space<vmem>>, vector<1x128xf32>,
    return
  }
  func.func @transform_0(%arg0: i32) -> (i32, i32) {
    %c0_i32 = arith.constant 0 : i32
    %c0_i32_0 = arith.constant 0 : i32
    return %arg0, %c0_i32 : i32, i32
  }
  func.func @transform_1(%arg0: i32) -> (i32, i32) {
    %c0_i32 = arith.constant 0 : i32
    %c0_i32_0 = arith.constant 0 : i32
    return %arg0, %c0_i32 : i32, i32
  }
}

</mosaic_0001>

<bundles_post_ra>
// kernel: tpu_custom_call.1
= control target key start
LH: loop header
LB: loop body
LE: loop exit
PB: predicated region body
PF: predicated region fallthrough
CT: control target
= control target key end

     0   :  { %6 = vsyncpa [#allocation3], 0  ;;  %s1743_s0 = inlined_call_operand.hbm [shape: f32[1,2048], index: 0, kind: input, shape index: {}]   ;;  %s1744_s1 = inlined_call_operand.hbm [shape: f32[1,128], index: 1, kind: output, shape index: {}]  }
   0x1   :  { %7 = vsyncpa [#allocation4], 0  ;;  %s1338_s6 = smov [#allocation2]  }
   0x2   :  { %s14_s7 = sshll.u32 %s1338_s6, 4  ;;  %s15_s7 = int_to_ptr.vmem [resolvable:$true] %s14_s7 }
   0x3   :  { %s1302_s8 = scalar_lea.vmem %s15_s7, 256  ;;  %p1307_p1 = scmp.lt.s32.totalorder %s15_s7, %s15_s7 }
   0x4   :  { %p1303_p0 = scmp.ne.s32.totalorder %s15_s7, %s1302_s8  ;;  %p1308_p2 = scmp.lt.s32.totalorder %s1302_s8, %s1302_s8 }
   0x6   :  { %p1309_p3 = por %p1308_p2, %p1307_p1 }
   0x8   :  { %p1310_p4 = pnand %p1309_p3, %p1303_p0 }
   0xa   :  { %1313 = shalt.err (!%p1310_p4)
}
   0xb   :  { %17 = dma.hbm_to_vmem [thread:$0]  %s1743_s0, 256, %s15_s7, [#allocation3]  }
   0xc   :  { %1334 = dma.done.wait [#allocation3], 256  }
   0xd   :  { %1335 = vsyncadd [#allocation3], 4294967040  ;;  %v21_v0 = vld [vmem:[#allocation2] sm:$0x1]  ;;  %s1339_s11 = smov 112   ;;  %s1340_s12 = smov 80   ;;  %v44_v9 = vlaneseq }
   0xe   :  { %23 = vrot.lane.b32.xlu0 %v21_v0, %s1339_s11  ;;  %27 = vrot.lane.b32.xlu1 %v21_v0, %s1340_s12  ;;  %s1341_s13 = smov 96   ;;  %s1342_s14 = smov 64   ;;  %v1367_v1 = vld [vmem:[#allocation2 + $0x2] sm:$0x1]  ;;  %v1372_v2 = vld [vmem:[#allocation2 + $0x1] sm:$0x1] }
   0xf   :  { %s1343_s15 = smov 48   ;;  %s1344_s16 = smov 32   ;;  %v1400_v3 = vld [vmem:[#allocation2 + $0x3] sm:$0x1]  ;;  %v1416_v4 = vld [vmem:[#allocation2 + $0x4] sm:$0x1] }
  0x10   :  { %s1345_s0 = smov 16   ;;  %v1346_v7 = vmov 1966171168   ;;  %v1421_v13 = vshrl.u32 %v44_v9, 7  ;;  %vm87_vm0 = vcmask 130048   ;;  %vm1239_vm1 = vcmask 64512  }
  0x11   :  { %v42_v8 = vunpack.c.l.s4 %v1346_v7  ;;  %vm1242_vm2 = vcmask 195584   ;;  %vm1244_vm3 = vcmask 261120   ;;  %vm1246_vm4 = vcmask 326656   ;;  %s1347_s17 = smov [#allocation5]  }
  0x12   :  { %25 = vrot.lane.b32.xlu0 %v21_v0, %s1341_s13  ;;  %29 = vrot.lane.b32.xlu1 %v21_v0, %s1342_s14  ;;  %vm1248_vm5 = vcmask 392192   ;;  %vm1250_vm6 = vcmask 457728   ;;  %vm1252_vm7 = vcmask 523264   ;;  %vm1254_vm8 = vcmask 588800   ;;  %s1275_s18 = sshll.u32 %s1347_s17, 4  ;;  %s1276_s18 = int_to_ptr.vmem [resolvable:$true] %s1275_s18 }
  0x13   :  { %v43_v12 = vunpack.c.0.s8 %v42_v8  ;;  %vm1256_vm9 = vcmask 654336   ;;  %vm1258_vm10 = vcmask 719872   ;;  %vm1260_vm11 = vcmask 785408   ;;  %s1314_s19 = scalar_lea.vmem %s1276_s18, 16  ;;  %s1318_s20 = scalar_lea.vmem %s1276_s18, 32 }
  0x14   :  { %vm1262_vm12 = vcmask 850944   ;;  %vm1264_vm13 = vcmask 916480   ;;  %vm1266_vm14 = vcmask 982016   ;;  %p1315_p5 = scmp.ne.s32.totalorder %s1276_s18, %s1314_s19  ;;  %p1319_p6 = scmp.lt.s32.totalorder %s1276_s18, %s1276_s18 }
  0x15   :  { %v1424_v17 = vsub.s32 %v43_v12, %v1421_v13  ;;  %p1320_p7 = scmp.lt.s32.totalorder %s1318_s20, %s1314_s19 }
  0x16   :  { %31 = vrot.lane.b32.xlu0 %v21_v0, %s1343_s15  ;;  %33 = vrot.lane.b32.xlu1 %v21_v0, %s1344_s16 }
  0x17   :  { %p1321_p8 = por %p1320_p7, %p1319_p6 }
  0x19   :  { %p1322_p9 = pnand %p1321_p8, %p1315_p5 }
  0x1a   :  { %35 = vrot.lane.b32.xlu0 %v21_v0, %s1345_s0  ;;  %162 = vrot.lane.b32.xlu1 %v1367_v1, %s1339_s11 }
  0x1e   :  { %93 = vrot.lane.b32.xlu0 %v1372_v2, %s1339_s11  ;;  %164 = vrot.lane.b32.xlu1 %v1367_v1, %s1341_s13 }
  0x22   :  { %95 = vrot.lane.b32.xlu0 %v1372_v2, %s1341_s13  ;;  %166 = vrot.lane.b32.xlu1 %v1367_v1, %s1340_s12 }
  0x26   :  { %97 = vrot.lane.b32.xlu0 %v1372_v2, %s1340_s12  ;;  %168 = vrot.lane.b32.xlu1 %v1367_v1, %s1342_s14 }
  0x2a   :  { %99 = vrot.lane.b32.xlu0 %v1372_v2, %s1342_s14  ;;  %172 = vrot.lane.b32.xlu1 %v1367_v1, %s1344_s16 }
  0x2e   :  { %101 = vrot.lane.b32.xlu0 %v1372_v2, %s1343_s15  ;;  %174 = vrot.lane.b32.xlu1 %v1367_v1, %s1345_s0 }
  0x32   :  { %103 = vrot.lane.b32.xlu0 %v1372_v2, %s1344_s16 }
  0x36   :  { %105 = vrot.lane.b32.xlu0 %v1372_v2, %s1345_s0 }
  0x3a   :  { %170 = vrot.lane.b32.xlu0 %v1367_v1, %s1343_s15 }
  0x3e   :  { %231 = vrot.lane.b32.xlu0 %v1400_v3, %s1339_s11 }
  0x42   :  { %233 = vrot.lane.b32.xlu0 %v1400_v3, %s1341_s13 }
  0x46   :  { %235 = vrot.lane.b32.xlu0 %v1400_v3, %s1340_s12 }
  0x4a   :  { %237 = vrot.lane.b32.xlu0 %v1400_v3, %s1342_s14 }
  0x4e   :  { %239 = vrot.lane.b32.xlu0 %v1400_v3, %s1343_s15 }
  0x52   :  { %241 = vrot.lane.b32.xlu0 %v1400_v3, %s1344_s16 }
  0x56   :  { %243 = vrot.lane.b32.xlu0 %v1400_v3, %s1345_s0 }
  0x5a   :  { %300 = vrot.lane.b32.xlu0 %v1416_v4, %s1339_s11 }
  0x80   :  { %v24_v5 = vpop.permute.xlu0 %23  ;;  %v28_v6 = vpop.permute.xlu1 %27 }
  0x81   :  { %v37_v18 = vcombine.low %v21_v0, %v24_v5 }
  0x83   :  { %v47_v23 = vrot.slane %v37_v18, %v1424_v17 }
  0x84   :  { %v26_v10 = vpop.permute.xlu0 %25  ;;  %v30_v11 = vpop.permute.xlu1 %29 }
  0x85   :  { %v38_v14 = vcombine.low %v26_v10, %v28_v6 }
  0x87   :  { %v54_v19 = vrot.slane %v38_v14, %v1424_v17 }
  0x88   :  { %v32_v15 = vpop.permute.xlu0 %31  ;;  %v34_v16 = vpop.permute.xlu1 %33 }
  0x89   :  { %v39_v20 = vcombine.low %v30_v11, %v32_v15  ;;  %v69_v25 = vcombine.low %v47_v23, %v54_v19 }
  0x8b   :  { %v61_v26 = vrot.slane %v39_v20, %v1424_v17  ;;  %v77_v31 = vrot.slane %v69_v25, %v1424_v17 }
  0x8c   :  { %v36_v21 = vpop.permute.xlu0 %35  ;;  %v163_v22 = vpop.permute.xlu1 %162 }
  0x8d   :  { %v40_v24 = vcombine.low %v34_v16, %v36_v21  ;;  %v176_v43 = vcombine.low %v1367_v1, %v163_v22 }
  0x8f   :  { %v68_v27 = vrot.slane %v40_v24, %v1424_v17  ;;  %v186_v50 = vrot.slane %v176_v43, %v1424_v17 }
  0x90   :  { %v94_v28 = vpop.permute.xlu0 %93  ;;  %v165_v29 = vpop.permute.xlu1 %164 }
  0x91   :  { %v70_v30 = vcombine.low %v61_v26, %v68_v27  ;;  %v107_v45 = vcombine.low %v1372_v2, %v94_v28 }
  0x93   :  { %v84_v32 = vrot.slane %v70_v30, %v1424_v17  ;;  %v117_v52 = vrot.slane %v107_v45, %v1424_v17 }
  0x94   :  { %v96_v33 = vpop.permute.xlu0 %95  ;;  %v167_v34 = vpop.permute.xlu1 %166 }
  0x95   :  { %v85_v35 = vcombine.low %v77_v31, %v84_v32  ;;  %v177_v46 = vcombine.low %v165_v29, %v167_v34 }
  0x97   :  { %v88_v36 = vsel %vm87_vm0, %v85_v35, -inf  ;;  %v193_v53 = vrot.slane %v177_v46, %v1424_v17  ;;  %v1469_v35 = vld [vmem:[#allocation2 + $0x5] sm:$0x1] }
  0x98   :  { %89 = vmax.xlane.f32.xlu1 %v88_v36  ;;  %v98_v37 = vpop.permute.xlu0 %97  ;;  %v169_v38 = vpop.permute.xlu1 %168  ;;  %v1486_v36 = vand.u32 127, %v44_v9 }
  0x99   :  { %v108_v42 = vcombine.low %v96_v33, %v98_v37  ;;  %v208_v60 = vcombine.low %v186_v50, %v193_v53 }
  0x9a   :  { %v1135_v37 = vadd.s32 4294967288, %v1486_v36 }
  0x9b   :  { %v124_v48 = vrot.slane %v108_v42, %v1424_v17  ;;  %v216_v8 = vrot.slane %v208_v60, %v1424_v17 }
  0x9c   :  { %v100_v39 = vpop.permute.xlu0 %99  ;;  %v173_v41 = vpop.permute.xlu1 %172 }
  0x9d   :  { %v139_v56 = vcombine.low %v117_v52, %v124_v48 }
  0x9f   :  { %v147_v1 = vrot.slane %v139_v56, %v1424_v17 }
  0xa0   :  { %v102_v40 = vpop.permute.xlu0 %101  ;;  %v175_v47 = vpop.permute.xlu1 %174 }
  0xa1   :  { %v109_v49 = vcombine.low %v100_v39, %v102_v40  ;;  %v179_v55 = vcombine.low %v173_v41, %v175_v47  ;;  %v1142_v39 = vadd.s32 4294967280, %v1486_v36  ;;  %v1138_v40 = vsub.s32 %v1135_v37, %v1421_v13  ;;  %v1520_v37 = vld [vmem:[#allocation2 + $0x7] sm:$0x1] }
  0xa2   :  { %v1131_v41 = vsub.s32 %v1486_v36, %v1421_v13 }
  0xa3   :  { %v131_v57 = vrot.slane %v109_v49, %v1424_v17  ;;  %v207_v62 = vrot.slane %v179_v55, %v1424_v17 }
  0xa4   :  { %v104_v44 = vpop.permute.xlu0 %103 }
  0xa8   :  { %v106_v51 = vpop.permute.xlu0 %105 }
  0xa9   :  { %v110_v54 = vcombine.low %v104_v44, %v106_v51  ;;  %v1145_v44 = vsub.s32 %v1142_v39, %v1421_v13  ;;  %v1149_v51 = vadd.s32 4294967272, %v1486_v36 }
  0xab   :  { %v138_v58 = vrot.slane %v110_v54, %v1424_v17  ;;  %v1152_v53 = vsub.s32 %v1149_v51, %v1421_v13 }
  0xac   :  { %v171_v59 = vpop.permute.xlu0 %170 }
  0xad   :  { %v140_v61 = vcombine.low %v131_v57, %v138_v58  ;;  %v178_v63 = vcombine.low %v169_v38, %v171_v59 }
  0xaf   :  { %v200_v0 = vrot.slane %v178_v63, %v1424_v17  ;;  %v154_v2 = vrot.slane %v140_v61, %v1424_v17 }
  0xb0   :  { %v232_v5 = vpop.permute.xlu0 %231 }
  0xb1   :  { %v209_v6 = vcombine.low %v200_v0, %v207_v62  ;;  %v155_v7 = vcombine.low %v147_v1, %v154_v2  ;;  %v245_v22 = vcombine.low %v1400_v3, %v232_v5 }
  0xb3   :  { %v157_v10 = vsel %vm87_vm0, %v155_v7, -inf  ;;  %v223_v11 = vrot.slane %v209_v6, %v1424_v17  ;;  %v255_v26 = vrot.slane %v245_v22, %v1424_v17 }
  0xb4   :  { %158 = vmax.xlane.f32.xlu0 %v157_v10  ;;  %v234_v12 = vpop.permute.xlu0 %233 }
  0xb5   :  { %v224_v14 = vcombine.low %v216_v8, %v223_v11 }
  0xb7   :  { %v226_v15 = vsel %vm87_vm0, %v224_v14, -inf }
  0xb8   :  { %227 = vmax.xlane.f32.xlu1 %v226_v15  ;;  %v236_v16 = vpop.permute.xlu0 %235 }
  0xb9   :  { %v246_v20 = vcombine.low %v234_v12, %v236_v16 }
  0xbb   :  { %v262_v23 = vrot.slane %v246_v20, %v1424_v17 }
  0xbc   :  { %v238_v18 = vpop.permute.xlu0 %237 }
  0xbd   :  { %v277_v28 = vcombine.low %v255_v26, %v262_v23 }
  0xbf   :  { %v285_v3 = vrot.slane %v277_v28, %v1424_v17 }
  0xc0   :  { %v240_v19 = vpop.permute.xlu0 %239 }
  0xc1   :  { %v247_v24 = vcombine.low %v238_v18, %v240_v19 }
  0xc3   :  { %v269_v29 = vrot.slane %v247_v24, %v1424_v17 }
  0xc4   :  { %v242_v21 = vpop.permute.xlu0 %241 }
  0xc8   :  { %v244_v25 = vpop.permute.xlu0 %243 }
  0xc9   :  { %v248_v27 = vcombine.low %v242_v21, %v244_v25 }
  0xca   :  { %304 = vrot.lane.b32.xlu0 %v1416_v4, %s1340_s12 }
  0xcb   :  { %v276_v30 = vrot.slane %v248_v27, %v1424_v17 }
  0xcc   :  { %v301_v38 = vpop.permute.xlu0 %300 }
  0xcd   :  { %v278_v31 = vcombine.low %v269_v29, %v276_v30  ;;  %v314_v59 = vcombine.low %v1416_v4, %v301_v38  ;;  %v1156_v38 = vadd.s32 4294967264, %v1486_v36 }
  0xce   :  { %306 = vrot.lane.b32.xlu0 %v1416_v4, %s1342_s14 }
  0xcf   :  { %v292_v32 = vrot.slane %v278_v31, %v1424_v17  ;;  %v324_v1 = vrot.slane %v314_v59, %v1424_v17  ;;  %v436_v31 = vld [vmem:[#allocation2 + $0x6] sm:$0x1]  ;;  %v1159_v39 = vsub.s32 %v1156_v38, %v1421_v13 }
  0xd1   :  { %v293_v33 = vcombine.low %v285_v3, %v292_v32 }
  0xd2   :  { %308 = vrot.lane.b32.xlu0 %v1416_v4, %s1343_s15 }
  0xd3   :  { %v295_v34 = vsel %vm87_vm0, %v293_v33, -inf }
  0xd4   :  { %296 = vmax.xlane.f32.xlu1 %v295_v34 }
  0xd6   :  { %310 = vrot.lane.b32.xlu0 %v1416_v4, %s1344_s16 }
  0xe5   :  { %302 = vrot.lane.b32.xlu1 %v1416_v4, %s1341_s13 }
  0xe9   :  { %312 = vrot.lane.b32.xlu1 %v1416_v4, %s1345_s0 }
  0xed   :  { %369 = vrot.lane.b32.xlu1 %v1469_v35, %s1339_s11 }
  0xf1   :  { %371 = vrot.lane.b32.xlu1 %v1469_v35, %s1341_s13 }
  0xf5   :  { %373 = vrot.lane.b32.xlu1 %v1469_v35, %s1340_s12 }
  0xf9   :  { %375 = vrot.lane.b32.xlu1 %v1469_v35, %s1342_s14 }
  0xfd   :  { %377 = vrot.lane.b32.xlu1 %v1469_v35, %s1343_s15 }
 0x101   :  { %379 = vrot.lane.b32.xlu1 %v1469_v35, %s1344_s16 }
 0x105   :  { %381 = vrot.lane.b32.xlu1 %v1469_v35, %s1345_s0 }
 0x121   :  { %v90_v42 = vpop.xlane.xlu1 %89 }
 0x122   :  { %v1132_v46 = vrot.slane %v90_v42, %v1131_v41 }
 0x13d   :  { %v159_v43 = vpop.xlane.xlu0 %158 }
 0x13e   :  { %v1139_v45 = vrot.slane %v159_v43, %v1138_v40 }
 0x140   :  { %v1240_v48 = vsel %vm1239_vm1, %v1132_v46, %v1139_v45 }
 0x141   :  { %v228_v47 = vpop.xlane.xlu1 %227  ;;  %v305_v50 = vpop.permute.xlu0 %304 }
 0x142   :  { %v1146_v9 = vrot.slane %v228_v47, %v1145_v44  ;;  %v1163_v47 = vadd.s32 4294967256, %v1486_v36 }
 0x144   :  { %v1241_v49 = vsel %vm87_vm0, %v1240_v48, %v1146_v9  ;;  %v1166_v9 = vsub.s32 %v1163_v47, %v1421_v13 }
 0x145   :  { %v307_v52 = vpop.permute.xlu0 %306 }
 0x149   :  { %v309_v55 = vpop.permute.xlu0 %308 }
 0x14a   :  { %v316_v61 = vcombine.low %v307_v52, %v309_v55 }
 0x14c   :  { %v338_v2 = vrot.slane %v316_v61, %v1424_v17 }
 0x14d   :  { %v311_v62 = vpop.permute.xlu0 %310 }
 0x15d   :  { %v297_v54 = vpop.xlane.xlu1 %296 }
 0x15e   :  { %v1153_v56 = vrot.slane %v297_v54, %v1152_v53 }
 0x160   :  { %v1243_v57 = vsel %vm1242_vm2, %v1241_v49, %v1153_v56 }
 0x161   :  { %v303_v58 = vpop.permute.xlu1 %302 }
 0x162   :  { %v315_v60 = vcombine.low %v303_v58, %v305_v50 }
 0x164   :  { %v331_v63 = vrot.slane %v315_v60, %v1424_v17 }
 0x165   :  { %v313_v0 = vpop.permute.xlu1 %312 }
 0x166   :  { %v317_v5 = vcombine.low %v311_v62, %v313_v0  ;;  %v346_v6 = vcombine.low %v324_v1, %v331_v63 }
 0x168   :  { %v345_v7 = vrot.slane %v317_v5, %v1424_v17  ;;  %v354_v11 = vrot.slane %v346_v6, %v1424_v17  ;;  %v574_v6 = vld [vmem:[#allocation2 + $0x8] sm:$0x1] }
 0x169   :  { %v370_v8 = vpop.permute.xlu1 %369 }
 0x16a   :  { %v347_v10 = vcombine.low %v338_v2, %v345_v7  ;;  %v383_v22 = vcombine.low %v1469_v35, %v370_v8 }
 0x16c   :  { %v361_v4 = vrot.slane %v347_v10, %v1424_v17  ;;  %v393_v26 = vrot.slane %v383_v22, %v1424_v17 }
 0x16d   :  { %v372_v12 = vpop.permute.xlu1 %371 }
 0x16e   :  { %v362_v14 = vcombine.low %v354_v11, %v361_v4  ;;  %v1170_v4 = vadd.s32 4294967248, %v1486_v36 }
 0x170   :  { %v364_v15 = vsel %vm87_vm0, %v362_v14, -inf }
 0x171   :  { %v374_v16 = vpop.permute.xlu1 %373  ;;  %365 = vmax.xlane.f32.xlu0 %v364_v15 }
 0x172   :  { %v384_v20 = vcombine.low %v372_v12, %v374_v16  ;;  %v1173_v12 = vsub.s32 %v1170_v4, %v1421_v13 }
 0x174   :  { %v400_v23 = vrot.slane %v384_v20, %v1424_v17 }
 0x175   :  { %v376_v18 = vpop.permute.xlu1 %375 }
 0x176   :  { %v415_v28 = vcombine.low %v393_v26, %v400_v23 }
 0x178   :  { %v423_v32 = vrot.slane %v415_v28, %v1424_v17 }
 0x179   :  { %v378_v19 = vpop.permute.xlu1 %377 }
 0x17a   :  { %v385_v24 = vcombine.low %v376_v18, %v378_v19 }
 0x17c   :  { %v407_v29 = vrot.slane %v385_v24, %v1424_v17 }
 0x17d   :  { %v380_v21 = vpop.permute.xlu1 %379 }
 0x181   :  { %v382_v25 = vpop.permute.xlu1 %381 }
 0x182   :  { %v386_v27 = vcombine.low %v380_v21, %v382_v25 }
 0x184   :  { %v414_v30 = vrot.slane %v386_v27, %v1424_v17 }
 0x186   :  { %v416_v3 = vcombine.low %v407_v29, %v414_v30 }
 0x187   :  { %438 = vrot.lane.b32.xlu0 %v436_v31, %s1339_s11 }
 0x188   :  { %v430_v33 = vrot.slane %v416_v3, %v1424_v17 }
 0x18a   :  { %v431_v34 = vcombine.low %v423_v32, %v430_v33 }
 0x18b   :  { %440 = vrot.lane.b32.xlu0 %v436_v31, %s1341_s13 }
 0x18c   :  { %v433_v35 = vsel %vm87_vm0, %v431_v34, -inf  ;;  %v643_v34 = vld [vmem:[#allocation2 + $0x9] sm:$0x1] }
 0x18d   :  { %434 = vmax.xlane.f32.xlu1 %v433_v35 }
 0x18f   :  { %442 = vrot.lane.b32.xlu0 %v436_v31, %s1340_s12 }
 0x193   :  { %444 = vrot.lane.b32.xlu0 %v436_v31, %s1342_s14 }
 0x197   :  { %446 = vrot.lane.b32.xlu0 %v436_v31, %s1343_s15 }
 0x19b   :  { %450 = vrot.lane.b32.xlu0 %v436_v31, %s1345_s0 }
 0x19e   :  { %448 = vrot.lane.b32.xlu1 %v436_v31, %s1344_s16 }
 0x1a2   :  { %507 = vrot.lane.b32.xlu1 %v1520_v37, %s1339_s11 }
 0x1a6   :  { %509 = vrot.lane.b32.xlu1 %v1520_v37, %s1341_s13 }
 0x1aa   :  { %511 = vrot.lane.b32.xlu1 %v1520_v37, %s1340_s12 }
 0x1ae   :  { %513 = vrot.lane.b32.xlu1 %v1520_v37, %s1342_s14 }
 0x1b2   :  { %515 = vrot.lane.b32.xlu1 %v1520_v37, %s1343_s15 }
 0x1b6   :  { %517 = vrot.lane.b32.xlu1 %v1520_v37, %s1344_s16 }
 0x1fa   :  { %v366_v40 = vpop.xlane.xlu0 %365 }
 0x1fb   :  { %v1160_v41 = vrot.slane %v366_v40, %v1159_v39  ;;  %v1177_v40 = vadd.s32 4294967240, %v1486_v36 }
 0x1fd   :  { %v1245_v42 = vsel %vm1244_vm3, %v1243_v57, %v1160_v41  ;;  %v1180_v41 = vsub.s32 %v1177_v40, %v1421_v13 }
 0x1fe   :  { %v439_v43 = vpop.permute.xlu0 %438 }
 0x1ff   :  { %v452_v49 = vcombine.low %v436_v31, %v439_v43 }
 0x201   :  { %v462_v54 = vrot.slane %v452_v49, %v1424_v17 }
 0x202   :  { %v441_v44 = vpop.permute.xlu0 %440 }
 0x206   :  { %v443_v45 = vpop.permute.xlu0 %442 }
 0x207   :  { %v453_v50 = vcombine.low %v441_v44, %v443_v45 }
 0x209   :  { %v469_v55 = vrot.slane %v453_v50, %v1424_v17 }
 0x20a   :  { %v445_v46 = vpop.permute.xlu0 %444 }
 0x20b   :  { %v484_v60 = vcombine.low %v462_v54, %v469_v55 }
 0x20d   :  { %v492_v0 = vrot.slane %v484_v60, %v1424_v17 }
 0x20e   :  { %v447_v48 = vpop.permute.xlu0 %446 }
 0x20f   :  { %v454_v56 = vcombine.low %v445_v46, %v447_v48 }
 0x211   :  { %v476_v61 = vrot.slane %v454_v56, %v1424_v17 }
 0x212   :  { %v451_v53 = vpop.permute.xlu0 %450 }
 0x216   :  { %v435_v51 = vpop.xlane.xlu1 %434 }
 0x217   :  { %v1167_v52 = vrot.slane %v435_v51, %v1166_v9 }
 0x219   :  { %v1247_v57 = vsel %vm1246_vm4, %v1245_v42, %v1167_v52 }
 0x21a   :  { %v449_v58 = vpop.permute.xlu1 %448 }
 0x21b   :  { %v455_v59 = vcombine.low %v449_v58, %v451_v53 }
 0x21d   :  { %v483_v62 = vrot.slane %v455_v59, %v1424_v17 }
 0x21e   :  { %v508_v7 = vpop.permute.xlu1 %507 }
 0x21f   :  { %v485_v63 = vcombine.low %v476_v61, %v483_v62  ;;  %v521_v15 = vcombine.low %v1520_v37, %v508_v7  ;;  %v712_v61 = vld [vmem:[#allocation2 + $0xa] sm:$0x1] }
 0x221   :  { %v499_v1 = vrot.slane %v485_v63, %v1424_v17  ;;  %v531_v21 = vrot.slane %v521_v15, %v1424_v17 }
 0x222   :  { %v510_v8 = vpop.permute.xlu1 %509 }
 0x223   :  { %v500_v2 = vcombine.low %v492_v0, %v499_v1 }
 0x225   :  { %v502_v5 = vsel %vm87_vm0, %v500_v2, -inf  ;;  %v1184_v2 = vadd.s32 4294967232, %v1486_v36 }
 0x226   :  { %503 = vmax.xlane.f32.xlu0 %v502_v5  ;;  %v512_v10 = vpop.permute.xlu1 %511 }
 0x227   :  { %v522_v16 = vcombine.low %v510_v8, %v512_v10  ;;  %v1187_v5 = vsub.s32 %v1184_v2, %v1421_v13 }
 0x229   :  { %v538_v22 = vrot.slane %v522_v16, %v1424_v17 }
 0x22a   :  { %v514_v11 = vpop.permute.xlu1 %513 }
 0x22b   :  { %v553_v27 = vcombine.low %v531_v21, %v538_v22 }
 0x22d   :  { %v561_v31 = vrot.slane %v553_v27, %v1424_v17 }
 0x22e   :  { %v516_v14 = vpop.permute.xlu1 %515 }
 0x22f   :  { %v523_v23 = vcombine.low %v514_v11, %v516_v14 }
 0x231   :  { %v545_v28 = vrot.slane %v523_v23, %v1424_v17 }
 0x232   :  { %v518_v20 = vpop.permute.xlu1 %517 }
 0x23c   :  { %519 = vrot.lane.b32.xlu0 %v1520_v37, %s1345_s0 }
 0x240   :  { %576 = vrot.lane.b32.xlu0 %v574_v6, %s1339_s11 }
 0x244   :  { %578 = vrot.lane.b32.xlu0 %v574_v6, %s1341_s13 }
 0x248   :  { %580 = vrot.lane.b32.xlu0 %v574_v6, %s1340_s12 }
 0x24c   :  { %582 = vrot.lane.b32.xlu0 %v574_v6, %s1342_s14 }
 0x250   :  { %584 = vrot.lane.b32.xlu0 %v574_v6, %s1343_s15 }
 0x254   :  { %588 = vrot.lane.b32.xlu0 %v574_v6, %s1345_s0 }
 0x2af   :  { %v504_v18 = vpop.xlane.xlu0 %503 }
 0x2b0   :  { %v1174_v19 = vrot.slane %v504_v18, %v1173_v12 }
 0x2b2   :  { %v1249_v24 = vsel %vm1248_vm5, %v1247_v57, %v1174_v19 }
 0x2b3   :  { %v520_v25 = vpop.permute.xlu0 %519 }
 0x2b4   :  { %v524_v26 = vcombine.low %v518_v20, %v520_v25 }
 0x2b6   :  { %v552_v29 = vrot.slane %v524_v26, %v1424_v17 }
 0x2b7   :  { %v577_v35 = vpop.permute.xlu0 %576 }
 0x2b8   :  { %v554_v30 = vcombine.low %v545_v28, %v552_v29  ;;  %v590_v43 = vcombine.low %v574_v6, %v577_v35  ;;  %v1596_v28 = vld [vmem:[#allocation2 + $0xb] sm:$0x1] }
 0x2ba   :  { %v568_v3 = vrot.slane %v554_v30, %v1424_v17  ;;  %v600_v9 = vrot.slane %v590_v43, %v1424_v17 }
 0x2bb   :  { %v579_v37 = vpop.permute.xlu0 %578 }
 0x2bc   :  { %v569_v32 = vcombine.low %v561_v31, %v568_v3 }
 0x2be   :  { %v571_v33 = vsel %vm87_vm0, %v569_v32, -inf  ;;  %v1191_v32 = vadd.s32 4294967224, %v1486_v36 }
 0x2bf   :  { %572 = vmax.xlane.f32.xlu1 %v571_v33  ;;  %v581_v38 = vpop.permute.xlu0 %580 }
 0x2c0   :  { %v591_v44 = vcombine.low %v579_v37, %v581_v38  ;;  %v1194_v33 = vsub.s32 %v1191_v32, %v1421_v13 }
 0x2c2   :  { %v607_v48 = vrot.slane %v591_v44, %v1424_v17 }
 0x2c3   :  { %v583_v39 = vpop.permute.xlu0 %582 }
 0x2c4   :  { %v622_v53 = vcombine.low %v600_v9, %v607_v48 }
 0x2c6   :  { %v630_v57 = vrot.slane %v622_v53, %v1424_v17 }
 0x2c7   :  { %v585_v42 = vpop.permute.xlu0 %584 }
 0x2c8   :  { %v592_v49 = vcombine.low %v583_v39, %v585_v42 }
 0x2ca   :  { %v614_v54 = vrot.slane %v592_v49, %v1424_v17 }
 0x2cb   :  { %v589_v47 = vpop.permute.xlu0 %588 }
 0x2d0   :  { %586 = vrot.lane.b32.xlu1 %v574_v6, %s1344_s16 }
 0x2d4   :  { %645 = vrot.lane.b32.xlu1 %v643_v34, %s1339_s11 }
 0x2d8   :  { %647 = vrot.lane.b32.xlu1 %v643_v34, %s1341_s13 }
 0x2dc   :  { %649 = vrot.lane.b32.xlu1 %v643_v34, %s1340_s12 }
 0x2e0   :  { %651 = vrot.lane.b32.xlu1 %v643_v34, %s1342_s14 }
 0x2e4   :  { %653 = vrot.lane.b32.xlu1 %v643_v34, %s1343_s15 }
 0x2e8   :  { %655 = vrot.lane.b32.xlu1 %v643_v34, %s1344_s16 }
 0x348   :  { %v573_v45 = vpop.xlane.xlu1 %572 }
 0x349   :  { %v1181_v46 = vrot.slane %v573_v45, %v1180_v41 }
 0x34b   :  { %v1251_v50 = vsel %vm1250_vm6, %v1249_v24, %v1181_v46 }
 0x34c   :  { %v587_v51 = vpop.permute.xlu1 %586 }
 0x34d   :  { %v593_v52 = vcombine.low %v587_v51, %v589_v47 }
 0x34f   :  { %v621_v55 = vrot.slane %v593_v52, %v1424_v17 }
 0x350   :  { %v646_v62 = vpop.permute.xlu1 %645 }
 0x351   :  { %v623_v56 = vcombine.low %v614_v54, %v621_v55  ;;  %v659_v7 = vcombine.low %v643_v34, %v646_v62  ;;  %v1621_v54 = vld [vmem:[#allocation2 + $0xc] sm:$0x1]  ;;  %v1635_v55 = vld [vmem:[#allocation2 + $0xd] sm:$0x1]  ;;  %v1198_v62 = vadd.s32 4294967216, %v1486_v36 }
 0x353   :  { %v637_v58 = vrot.slane %v623_v56, %v1424_v17  ;;  %v669_v12 = vrot.slane %v659_v7, %v1424_v17  ;;  %v1647_v56 = vld [vmem:[#allocation2 + $0xe] sm:$0x1] }
 0x354   :  { %v648_v63 = vpop.permute.xlu1 %647 }
 0x355   :  { %v638_v59 = vcombine.low %v630_v57, %v637_v58  ;;  %v1655_v57 = vld [vmem:[#allocation2 + $0xf] sm:$0x1] }
 0x357   :  { %v640_v60 = vsel %vm87_vm0, %v638_v59, -inf }
 0x358   :  { %641 = vmax.xlane.f32.xlu0 %v640_v60  ;;  %v650_v0 = vpop.permute.xlu1 %649 }
 0x359   :  { %v660_v8 = vcombine.low %v648_v63, %v650_v0  ;;  %v1201_v63 = vsub.s32 %v1198_v62, %v1421_v13 }
 0x35b   :  { %v676_v14 = vrot.slane %v660_v8, %v1424_v17 }
 0x35c   :  { %v652_v1 = vpop.permute.xlu1 %651 }
 0x35d   :  { %v691_v20 = vcombine.low %v669_v12, %v676_v14 }
 0x35f   :  { %v699_v24 = vrot.slane %v691_v20, %v1424_v17 }
 0x360   :  { %v654_v6 = vpop.permute.xlu1 %653 }
 0x361   :  { %v661_v15 = vcombine.low %v652_v1, %v654_v6 }
 0x363   :  { %v683_v21 = vrot.slane %v661_v15, %v1424_v17 }
 0x364   :  { %v656_v4 = vpop.permute.xlu1 %655 }
 0x36e   :  { %657 = vrot.lane.b32.xlu0 %v643_v34, %s1345_s0 }
 0x372   :  { %714 = vrot.lane.b32.xlu0 %v712_v61, %s1339_s11 }
 0x376   :  { %716 = vrot.lane.b32.xlu0 %v712_v61, %s1341_s13 }
 0x37a   :  { %718 = vrot.lane.b32.xlu0 %v712_v61, %s1340_s12 }
 0x37e   :  { %720 = vrot.lane.b32.xlu0 %v712_v61, %s1342_s14 }
 0x382   :  { %722 = vrot.lane.b32.xlu0 %v712_v61, %s1343_s15 }
 0x386   :  { %726 = vrot.lane.b32.xlu0 %v712_v61, %s1345_s0 }
 0x3e1   :  { %v642_v10 = vpop.xlane.xlu0 %641 }
 0x3e2   :  { %v1188_v11 = vrot.slane %v642_v10, %v1187_v5 }
 0x3e4   :  { %v1253_v16 = vsel %vm1252_vm7, %v1251_v50, %v1188_v11 }
 0x3e5   :  { %v658_v18 = vpop.permute.xlu0 %657 }
 0x3e6   :  { %v662_v19 = vcombine.low %v656_v4, %v658_v18 }
 0x3e8   :  { %v690_v22 = vrot.slane %v662_v19, %v1424_v17 }
 0x3e9   :  { %v715_v29 = vpop.permute.xlu0 %714 }
 0x3ea   :  { %v692_v23 = vcombine.low %v683_v21, %v690_v22  ;;  %v728_v35 = vcombine.low %v712_v61, %v715_v29 }
 0x3ec   :  { %v706_v25 = vrot.slane %v692_v23, %v1424_v17  ;;  %v738_v41 = vrot.slane %v728_v35, %v1424_v17 }
 0x3ed   :  { %v717_v30 = vpop.permute.xlu0 %716 }
 0x3ee   :  { %v707_v26 = vcombine.low %v699_v24, %v706_v25 }
 0x3f0   :  { %v709_v27 = vsel %vm87_vm0, %v707_v26, -inf }
 0x3f1   :  { %710 = vmax.xlane.f32.xlu1 %v709_v27  ;;  %v719_v31 = vpop.permute.xlu0 %718 }
 0x3f2   :  { %v729_v37 = vcombine.low %v717_v30, %v719_v31 }
 0x3f4   :  { %v745_v42 = vrot.slane %v729_v37, %v1424_v17 }
 0x3f5   :  { %v721_v3 = vpop.permute.xlu0 %720 }
 0x3f6   :  { %v760_v47 = vcombine.low %v738_v41, %v745_v42 }
 0x3f8   :  { %v768_v50 = vrot.slane %v760_v47, %v1424_v17 }
 0x3f9   :  { %v723_v34 = vpop.permute.xlu0 %722 }
 0x3fa   :  { %v730_v43 = vcombine.low %v721_v3, %v723_v34 }
 0x3fc   :  { %v752_v9 = vrot.slane %v730_v43, %v1424_v17 }
 0x3fd   :  { %v727_v40 = vpop.permute.xlu0 %726 }
 0x402   :  { %724 = vrot.lane.b32.xlu1 %v712_v61, %s1344_s16 }
 0x406   :  { %783 = vrot.lane.b32.xlu1 %v1596_v28, %s1339_s11 }
 0x40a   :  { %785 = vrot.lane.b32.xlu1 %v1596_v28, %s1341_s13 }
 0x40e   :  { %787 = vrot.lane.b32.xlu1 %v1596_v28, %s1340_s12 }
 0x412   :  { %789 = vrot.lane.b32.xlu1 %v1596_v28, %s1342_s14 }
 0x416   :  { %791 = vrot.lane.b32.xlu1 %v1596_v28, %s1343_s15 }
 0x41a   :  { %793 = vrot.lane.b32.xlu1 %v1596_v28, %s1344_s16 }
 0x47a   :  { %v711_v38 = vpop.xlane.xlu1 %710 }
 0x47b   :  { %v1195_v39 = vrot.slane %v711_v38, %v1194_v33  ;;  %v1205_v33 = vadd.s32 4294967208, %v1486_v36 }
 0x47d   :  { %v1255_v44 = vsel %vm1254_vm8, %v1253_v16, %v1195_v39  ;;  %v1208_v35 = vsub.s32 %v1205_v33, %v1421_v13 }
 0x47e   :  { %v725_v45 = vpop.permute.xlu1 %724 }
 0x47f   :  { %v731_v46 = vcombine.low %v725_v45, %v727_v40 }
 0x481   :  { %v759_v48 = vrot.slane %v731_v46, %v1424_v17 }
 0x482   :  { %v784_v58 = vpop.permute.xlu1 %783 }
 0x483   :  { %v761_v49 = vcombine.low %v752_v9, %v759_v48  ;;  %v797_v1 = vcombine.low %v1596_v28, %v784_v58 }
 0x485   :  { %v775_v51 = vrot.slane %v761_v49, %v1424_v17  ;;  %v807_v8 = vrot.slane %v797_v1, %v1424_v17 }
 0x486   :  { %v786_v59 = vpop.permute.xlu1 %785 }
 0x487   :  { %v776_v52 = vcombine.low %v768_v50, %v775_v51 }
 0x489   :  { %v778_v53 = vsel %vm87_vm0, %v776_v52, -inf }
 0x48a   :  { %779 = vmax.xlane.f32.xlu0 %v778_v53  ;;  %v788_v60 = vpop.permute.xlu1 %787 }
 0x48b   :  { %v798_v2 = vcombine.low %v786_v59, %v788_v60 }
 0x48d   :  { %v814_v10 = vrot.slane %v798_v2, %v1424_v17 }
 0x48e   :  { %v790_v61 = vpop.permute.xlu1 %789 }
 0x48f   :  { %v829_v15 = vcombine.low %v807_v8, %v814_v10 }
 0x491   :  { %v837_v20 = vrot.slane %v829_v15, %v1424_v17 }
 0x492   :  { %v792_v0 = vpop.permute.xlu1 %791 }
 0x493   :  { %v799_v11 = vcombine.low %v790_v61, %v792_v0 }
 0x495   :  { %v821_v16 = vrot.slane %v799_v11, %v1424_v17 }
 0x496   :  { %v794_v7 = vpop.permute.xlu1 %793 }
 0x4a0   :  { %795 = vrot.lane.b32.xlu0 %v1596_v28, %s1345_s0 }
 0x4a4   :  { %852 = vrot.lane.b32.xlu0 %v1621_v54, %s1339_s11 }
 0x4a8   :  { %854 = vrot.lane.b32.xlu0 %v1621_v54, %s1341_s13 }
 0x4ac   :  { %856 = vrot.lane.b32.xlu0 %v1621_v54, %s1340_s12 }
 0x4b0   :  { %858 = vrot.lane.b32.xlu0 %v1621_v54, %s1342_s14 }
 0x4b4   :  { %860 = vrot.lane.b32.xlu0 %v1621_v54, %s1343_s15 }
 0x4b8   :  { %864 = vrot.lane.b32.xlu0 %v1621_v54, %s1345_s0 }
 0x4bc   :  { %921 = vrot.lane.b32.xlu0 %v1635_v55, %s1339_s11 }
 0x4c0   :  { %923 = vrot.lane.b32.xlu0 %v1635_v55, %s1341_s13 }
 0x4c4   :  { %925 = vrot.lane.b32.xlu0 %v1635_v55, %s1340_s12 }
 0x4c8   :  { %929 = vrot.lane.b32.xlu0 %v1635_v55, %s1343_s15 }
 0x4cc   :  { %933 = vrot.lane.b32.xlu0 %v1635_v55, %s1345_s0 }
 0x4d0   :  { %992 = vrot.lane.b32.xlu0 %v1647_v56, %s1341_s13 }
 0x4d4   :  { %996 = vrot.lane.b32.xlu0 %v1647_v56, %s1342_s14 }
 0x4d8   :  { %1000 = vrot.lane.b32.xlu0 %v1647_v56, %s1344_s16 }
 0x4dc   :  { %1059 = vrot.lane.b32.xlu0 %v1655_v57, %s1339_s11 }
 0x4e0   :  { %1063 = vrot.lane.b32.xlu0 %v1655_v57, %s1340_s12 }
 0x4e4   :  { %1067 = vrot.lane.b32.xlu0 %v1655_v57, %s1343_s15 }
 0x4e8   :  { %1071 = vrot.lane.b32.xlu0 %v1655_v57, %s1345_s0 }
 0x513   :  { %v780_v5 = vpop.xlane.xlu0 %779 }
 0x514   :  { %v1202_v6 = vrot.slane %v780_v5, %v1201_v63 }
 0x516   :  { %v1257_v4 = vsel %vm1256_vm9, %v1255_v44, %v1202_v6 }
 0x517   :  { %v796_v12 = vpop.permute.xlu0 %795 }
 0x518   :  { %v800_v14 = vcombine.low %v794_v7, %v796_v12 }
 0x51a   :  { %v828_v18 = vrot.slane %v800_v14, %v1424_v17 }
 0x51b   :  { %v853_v24 = vpop.permute.xlu0 %852 }
 0x51c   :  { %v830_v19 = vcombine.low %v821_v16, %v828_v18  ;;  %v866_v37 = vcombine.low %v1621_v54, %v853_v24 }
 0x51e   :  { %v844_v21 = vrot.slane %v830_v19, %v1424_v17  ;;  %v876_v41 = vrot.slane %v866_v37, %v1424_v17 }
 0x51f   :  { %v855_v25 = vpop.permute.xlu0 %854 }
 0x520   :  { %v845_v22 = vcombine.low %v837_v20, %v844_v21 }
 0x522   :  { %v847_v23 = vsel %vm87_vm0, %v845_v22, -inf }
 0x523   :  { %848 = vmax.xlane.f32.xlu1 %v847_v23  ;;  %v857_v26 = vpop.permute.xlu0 %856 }
 0x524   :  { %v867_v38 = vcombine.low %v855_v25, %v857_v26 }
 0x526   :  { %v883_v42 = vrot.slane %v867_v38, %v1424_v17 }
 0x527   :  { %v859_v27 = vpop.permute.xlu0 %858 }
 0x528   :  { %v898_v9 = vcombine.low %v876_v41, %v883_v42 }
 0x52a   :  { %v906_v58 = vrot.slane %v898_v9, %v1424_v17 }
 0x52b   :  { %v861_v28 = vpop.permute.xlu0 %860 }
 0x52c   :  { %v868_v44 = vcombine.low %v859_v27, %v861_v28 }
 0x52e   :  { %v890_v48 = vrot.slane %v868_v44, %v1424_v17 }
 0x52f   :  { %v865_v29 = vpop.permute.xlu0 %864 }
 0x533   :  { %v922_v30 = vpop.permute.xlu0 %921 }
 0x534   :  { %862 = vrot.lane.b32.xlu1 %v1621_v54, %s1344_s16  ;;  %v935_v49 = vcombine.low %v1635_v55, %v922_v30 }
 0x536   :  { %v945_v59 = vrot.slane %v935_v49, %v1424_v17 }
 0x537   :  { %v924_v31 = vpop.permute.xlu0 %923 }
 0x538   :  { %927 = vrot.lane.b32.xlu1 %v1635_v55, %s1342_s14 }
 0x53b   :  { %v926_v3 = vpop.permute.xlu0 %925 }
 0x53c   :  { %931 = vrot.lane.b32.xlu1 %v1635_v55, %s1344_s16  ;;  %v936_v50 = vcombine.low %v924_v31, %v926_v3 }
 0x53e   :  { %v952_v60 = vrot.slane %v936_v50, %v1424_v17 }
 0x53f   :  { %v930_v32 = vpop.permute.xlu0 %929 }
 0x540   :  { %990 = vrot.lane.b32.xlu1 %v1647_v56, %s1339_s11  ;;  %v967_v55 = vcombine.low %v945_v59, %v952_v60 }
 0x542   :  { %v975_v11 = vrot.slane %v967_v55, %v1424_v17 }
 0x543   :  { %v934_v34 = vpop.permute.xlu0 %933 }
 0x544   :  { %994 = vrot.lane.b32.xlu1 %v1647_v56, %s1340_s12 }
 0x547   :  { %v993_v43 = vpop.permute.xlu0 %992 }
 0x548   :  { %998 = vrot.lane.b32.xlu1 %v1647_v56, %s1343_s15 }
 0x54b   :  { %v997_v53 = vpop.permute.xlu0 %996 }
 0x54c   :  { %1002 = vrot.lane.b32.xlu1 %v1647_v56, %s1345_s0 }
 0x54f   :  { %v1001_v2 = vpop.permute.xlu0 %1000 }
 0x550   :  { %1061 = vrot.lane.b32.xlu1 %v1655_v57, %s1341_s13 }
 0x553   :  { %v1060_v14 = vpop.permute.xlu0 %1059 }
 0x554   :  { %1065 = vrot.lane.b32.xlu1 %v1655_v57, %s1342_s14 }
 0x557   :  { %v1064_v21 = vpop.permute.xlu0 %1063 }
 0x558   :  { %1069 = vrot.lane.b32.xlu1 %v1655_v57, %s1344_s16 }
 0x55b   :  { %v1068_v31 = vpop.permute.xlu0 %1067 }
 0x55f   :  { %v1072_v38 = vpop.permute.xlu0 %1071 }
 0x5ac   :  { %v849_v39 = vpop.xlane.xlu1 %848 }
 0x5ad   :  { %v1209_v40 = vrot.slane %v849_v39, %v1208_v35  ;;  %v1073_v35 = vcombine.low %v1655_v57, %v1060_v14 }
 0x5af   :  { %v1700_v45 = vsel %vm1258_vm10, %v1257_v4, %v1209_v40 }
 0x5b0   :  { %v863_v46 = vpop.permute.xlu1 %862 }
 0x5b1   :  { %v869_v47 = vcombine.low %v863_v46, %v865_v29 }
 0x5b3   :  { %v897_v51 = vrot.slane %v869_v47, %v1424_v17 }
 0x5b4   :  { %v928_v52 = vpop.permute.xlu1 %927 }
 0x5b5   :  { %v899_v54 = vcombine.low %v890_v48, %v897_v51  ;;  %v937_v61 = vcombine.low %v928_v52, %v930_v32  ;;  %v1212_v52 = vadd.s32 4294967200, %v1486_v36 }
 0x5b7   :  { %v913_v62 = vrot.slane %v899_v54, %v1424_v17  ;;  %v959_v5 = vrot.slane %v937_v61, %v1424_v17  ;;  %v1226_v54 = vadd.s32 4294967184, %v1486_v36  ;;  %v1215_v59 = vsub.s32 %v1212_v52, %v1421_v13 }
 0x5b8   :  { %v932_v63 = vpop.permute.xlu1 %931 }
 0x5b9   :  { %v938_v0 = vcombine.low %v932_v63, %v934_v34  ;;  %v914_v1 = vcombine.low %v906_v58, %v913_v62  ;;  %v1233_v62 = vadd.s32 4294967176, %v1486_v36 }
 0x5bb   :  { %v966_v6 = vrot.slane %v938_v0, %v1424_v17  ;;  %v916_v7 = vsel %vm87_vm0, %v914_v1, -inf }
 0x5bc   :  { %v991_v8 = vpop.permute.xlu1 %990  ;;  %917 = vmax.xlane.f32.xlu1 %v916_v7 }
 0x5bd   :  { %v968_v10 = vcombine.low %v959_v5, %v966_v6  ;;  %v1004_v20 = vcombine.low %v1647_v56, %v991_v8 }
 0x5bf   :  { %v982_v4 = vrot.slane %v968_v10, %v1424_v17  ;;  %v1014_v25 = vrot.slane %v1004_v20, %v1424_v17 }
 0x5c0   :  { %v995_v12 = vpop.permute.xlu1 %994 }
 0x5c1   :  { %v983_v15 = vcombine.low %v975_v11, %v982_v4  ;;  %v1005_v16 = vcombine.low %v993_v43, %v995_v12  ;;  %v1083_v43 = vrot.slane %v1073_v35, %v1424_v17 }
 0x5c3   :  { %v985_v18 = vsel %vm87_vm0, %v983_v15, -inf  ;;  %v1021_v22 = vrot.slane %v1005_v16, %v1424_v17 }
 0x5c4   :  { %v999_v19 = vpop.permute.xlu1 %998  ;;  %986 = vmax.xlane.f32.xlu0 %v985_v18 }
 0x5c5   :  { %v1006_v23 = vcombine.low %v997_v53, %v999_v19  ;;  %v1036_v27 = vcombine.low %v1014_v25, %v1021_v22  ;;  %v1219_v53 = vadd.s32 4294967192, %v1486_v36 }
 0x5c7   :  { %v1028_v28 = vrot.slane %v1006_v23, %v1424_v17  ;;  %v1044_v33 = vrot.slane %v1036_v27, %v1424_v17  ;;  %v1222_v61 = vsub.s32 %v1219_v53, %v1421_v13 }
 0x5c8   :  { %v1003_v24 = vpop.permute.xlu1 %1002 }
 0x5c9   :  { %v1007_v26 = vcombine.low %v1001_v2, %v1003_v24  ;;  %v1236_v2 = vsub.s32 %v1233_v62, %v1421_v13 }
 0x5cb   :  { %v1035_v29 = vrot.slane %v1007_v26, %v1424_v17 }
 0x5cc   :  { %v1062_v30 = vpop.permute.xlu1 %1061 }
 0x5cd   :  { %v1037_v3 = vcombine.low %v1028_v28, %v1035_v29  ;;  %v1074_v32 = vcombine.low %v1062_v30, %v1064_v21 }
 0x5cf   :  { %v1051_v56 = vrot.slane %v1037_v3, %v1424_v17  ;;  %v1090_v39 = vrot.slane %v1074_v32, %v1424_v17 }
 0x5d0   :  { %v1066_v34 = vpop.permute.xlu1 %1065 }
 0x5d1   :  { %v1052_v37 = vcombine.low %v1044_v33, %v1051_v56  ;;  %v1075_v40 = vcombine.low %v1066_v34, %v1068_v31  ;;  %v1105_v46 = vcombine.low %v1083_v43, %v1090_v39 }
 0x5d3   :  { %v1054_v41 = vsel %vm87_vm0, %v1052_v37, -inf  ;;  %v1097_v47 = vrot.slane %v1075_v40, %v1424_v17  ;;  %v1113_v57 = vrot.slane %v1105_v46, %v1424_v17 }
 0x5d4   :  { %v1070_v42 = vpop.permute.xlu1 %1069  ;;  %1055 = vmax.xlane.f32.xlu0 %v1054_v41 }
 0x5d5   :  { %v1076_v44 = vcombine.low %v1070_v42, %v1072_v38 }
 0x5d7   :  { %v1104_v9 = vrot.slane %v1076_v44, %v1424_v17 }
 0x5d9   :  { %v1106_v48 = vcombine.low %v1097_v47, %v1104_v9 }
 0x5db   :  { %v1120_v49 = vrot.slane %v1106_v48, %v1424_v17  ;;  %v1229_v17 = vsub.s32 %v1226_v54, %v1421_v13 }
 0x5dd   :  { %v1121_v50 = vcombine.low %v1113_v57, %v1120_v49 }
 0x5df   :  { %v1123_v51 = vsel %vm87_vm0, %v1121_v50, -inf }
 0x5e0   :  { %1124 = vmax.xlane.f32.xlu1 %v1123_v51 }
 0x645   :  { %v918_v60 = vpop.xlane.xlu1 %917 }
 0x646   :  { %v1216_v0 = vrot.slane %v918_v60, %v1215_v59 }
 0x648   :  { %v1261_v5 = vsel %vm1260_vm11, %v1700_v45, %v1216_v0 }
 0x64d   :  { %v987_v58 = vpop.xlane.xlu0 %986 }
 0x64e   :  { %v1223_v1 = vrot.slane %v987_v58, %v1222_v61 }
 0x650   :  { %v1263_v7 = vsel %vm1262_vm12, %v1261_v5, %v1223_v1 }
 0x65d   :  { %v1056_v63 = vpop.xlane.xlu0 %1055 }
 0x65e   :  { %v1230_v55 = vrot.slane %v1056_v63, %v1229_v17 }
 0x660   :  { %v1265_v36 = vsel %vm1264_vm13, %v1263_v7, %v1230_v55 }
 0x669   :  { %v1125_v6 = vpop.xlane.xlu1 %1124 }
 0x66a   :  { %v1237_v8 = vrot.slane %v1125_v6, %v1236_v2 }
 0x66c   :  { %v1267_v10 = vsel %vm1266_vm14, %v1265_v36, %v1237_v8 }
 0x66d   :  { %1268 = vst [vmem:[#allocation5] sm:$0x1] %v1267_v10 }
 0x66e   :  { %1325 = shalt.err (!%p1322_p9)
}
 0x66f   :  { %1278 = dma.vmem_to_hbm [thread:$0]  %s1276_s18, 16, %s1744_s1, [#allocation4]  }
 0x670   :  { %1336 = dma.done.wait [#allocation4], 16  }
 0x671   :  { %1337 = vsyncadd [#allocation4], 4294967280 }
 0x672   :  { %1282 = vsyncpa [#allocation3], 1 }
 0x673   :  { %1283 = vsyncpa [#allocation4], 1 }

</bundles_post_ra>
